<compile_context>
chip_gen: v6e
topology: v6e:2x2x1
jax: 0.10.0
libtpu: 0.0.40
codegen_flags: <defaults>
</compile_context>

<pallas_src>
import math
import functools

import jax
import jax.numpy as jnp
from jax.experimental import pallas as pl
from jax.experimental.pallas import tpu as pltpu


def _round_up(x, m):
    return ((x + m - 1) // m) * m


def _vmem_capacity_bytes():
    """Physical VMEM per TensorCore (generation-aware), with a safe fallback."""
    try:
        info = pltpu.get_tpu_info()
        cap = getattr(info, "vmem_capacity_bytes", None)
        if cap:
            return int(cap)
    except Exception:
        pass
    return 64 * 1024 * 1024  # conservative: v7x per-TC VMEM


def _pick_tiles(n_pad, fout_pad, budget_bytes):
    """Choose (tm, tk) for the (TM, TK) adjacency tile against a VMEM budget."""
    headroom = 2 * 1024 * 1024  # Mosaic internal scratch, misc temporaries

    def needed(tm, tk):
        return (
            2 * tm * tk * 4            # adj f32 tile, double-buffered
            + tm * tk * 2              # in-kernel bf16 cast of the adj tile
            + 2 * tk * fout_pad * 2    # support bf16 tile, double-buffered
            + 2 * tm * fout_pad * 4    # f32 output tile, double-buffered
            + 2 * fout_pad * 4         # bias, double-buffered
            + headroom
        )

    # K tile must divide N_pad exactly (correctness of the accumulation); the
    # row tile may be ragged (cdiv grid), so no divisibility requirement there.
    tk_opts = [n_pad] + [t for t in (4096, 2048, 1024, 512, 256, 128)
                         if t < n_pad and n_pad % t == 0]
    tm_opts = [t for t in (1024, 512, 256, 128) if t <= n_pad]
    for tk in tk_opts:          # prefer an un-tiled K (single pass per row tile)
        for tm in tm_opts:      # then the largest row tile that fits
            if needed(tm, tk) <= budget_bytes:
                return tm, tk
    return 128, 128


def _gcn_adj_matmul_kernel(adj_ref, sup_ref, b_ref, o_ref):
    # adj_ref: (TM, TK)        f32   adjacency tile (cast to bf16 here, not in HBM)
    # sup_ref: (TK, Fout_pad)  bf16  support tile (precomputed x @ W)
    # b_ref:   (1, Fout_pad)   f32   bias (zeros when the layer has none)
    # o_ref:   (TM, Fout_pad)  f32   output row tile, resident across the K axis
    @pl.when(pl.program_id(2) == 0)
    def _():
        o_ref[...] = jnp.broadcast_to(b_ref[...], o_ref.shape)

    o_ref[...] += jnp.dot(
        adj_ref[...].astype(jnp.bfloat16),
        sup_ref[...],
        preferred_element_type=jnp.float32,
    )


@functools.partial(jax.jit, static_argnames=("tile_m", "tile_k"))
def graph_convolution(x, adj, weight, bias=None, *, tile_m=None, tile_k=None):
    """Pallas GCN forward.

    x:      (B, N, Fin)   float32
    adj:    (B, N, N)     float32
    weight: (Fin, Fout)   float32
    bias:   (1, 1, Fout)  float32 or None
    returns (B, N, Fout)  float32
    """
    B, N, Fin = x.shape
    Fout = weight.shape[1]

    N_pad = _round_up(N, 128)
    Fout_pad = _round_up(Fout, 128)

    # Cheap term: support = x @ W via plain XLA (O(B*N*Fin*Fout)), then a tiny
    # pad + bf16 cast for the MXU.  Zero padding is exact.
    support = jnp.matmul(x, weight)                                   # f32
    support = jnp.pad(support, ((0, 0), (0, N_pad - N), (0, Fout_pad - Fout)))
    support = support.astype(jnp.bfloat16)                            # (B, N_pad, Fout_pad)

    # Dominant term: adj stays f32 in HBM; only zero-pad when N is unaligned
    # (no extra HBM pass over the O(B*N^2) tensor in the aligned case).
    adj_in = adj if N_pad == N else jnp.pad(
        adj, ((0, 0), (0, N_pad - N), (0, N_pad - N)))

    if bias is None:
        b_p = jnp.zeros((1, Fout_pad), jnp.float32)
    else:
        b_p = jnp.pad(bias.reshape(1, Fout).astype(jnp.float32),
                      ((0, 0), (0, Fout_pad - Fout)))

    cap = _vmem_capacity_bytes()
    vmem_limit = min(int(cap * 0.85), 100 * 1024 * 1024)
    budget = min(int(cap * 0.70), vmem_limit - (4 << 20))

    tm, tk = _pick_tiles(N_pad, Fout_pad, budget)
    if tile_m is not None:
        tm = tile_m
    if tile_k is not None:
        tk = tile_k
    assert tm % 8 == 0 and tk % 128 == 0 and N_pad % tk == 0

    grid = (B, pl.cdiv(N_pad, tm), N_pad // tk)

    out_padded = pl.pallas_call(
        _gcn_adj_matmul_kernel,
        out_shape=jax.ShapeDtypeStruct((B, N_pad, Fout_pad), x.dtype),
        grid=grid,
        in_specs=[
            # adjacency (TM, TK) tile, f32 straight from HBM
            pl.BlockSpec((None, tm, tk), lambda b, j, k: (b, j, k)),
            # support (TK, Fout_pad) tile, bf16
            pl.BlockSpec((None, tk, Fout_pad), lambda b, j, k: (b, k, 0)),
            # bias (zeros if the layer has no bias)
            pl.BlockSpec((1, Fout_pad), lambda b, j, k: (0, 0)),
        ],
        out_specs=pl.BlockSpec((None, tm, Fout_pad), lambda b, j, k: (b, j, 0)),
        compiler_params=pltpu.CompilerParams(
            # batch and row-tile axes are independent -> both "parallel"
            # (megacore / v7x dual-TC); K is the reduction carried in o_ref.
            dimension_semantics=("parallel", "parallel", "arbitrary"),
            vmem_limit_bytes=vmem_limit,
        ),
    )(adj_in, support, b_p)

    # Slice the padding back off (also drops the bias written to pad rows).
    return out_padded[:, :N, :Fout]


def init_gcn_params(key, in_features, out_features, bias=False):
    """Deterministic re-implementation of GraphConvolution.reset_parameters."""
    stdv = 1.0 / math.sqrt(out_features)
    kw, kb = jax.random.split(key)
    weight = jax.random.uniform(
        kw, (in_features, out_features), jnp.float32, minval=-stdv, maxval=stdv)
    if bias:
        b = jax.random.uniform(
            kb, (1, 1, out_features), jnp.float32, minval=-stdv, maxval=stdv)
    else:
        b = None
    return weight, b


if __name__ == "__main__":
    key = jax.random.PRNGKey(0)
    k_x, k_adj, k_p, k_x2, k_adj2 = jax.random.split(key, 5)

    def ref_forward(x, adj, w, b):
        # True f32 reference (matches the PyTorch module's forward).
        sup = jnp.matmul(x, w)
        out = jnp.matmul(adj, sup)
        return out + b if b is not None else out

    def rel_err(a, b):
        return float(jnp.max(jnp.abs(a - b)) / (jnp.max(jnp.abs(b)) + 1e-6))

    # --- Test 1: small GCN shapes, with and without bias --------------------
    B, N, Fin, Fout = 2, 16, 32, 32
    x = jax.random.normal(k_x, (B, N, Fin), jnp.float32)
    adj = jax.random.normal(k_adj, (B, N, N), jnp.float32)

    weight_nb, _ = init_gcn_params(k_p, Fin, Fout, bias=False)
    out_nb = jax.block_until_ready(graph_convolution(x, adj, weight_nb, None))

    weight_b, bias_b = init_gcn_params(k_p, Fin, Fout, bias=True)
    out_b = jax.block_until_ready(graph_convolution(x, adj, weight_b, bias_b))

    assert out_nb.shape == (B, N, Fout)
    assert out_b.shape == (B, N, Fout)
    assert rel_err(out_nb, ref_forward(x, adj, weight_nb, None)) < 2e-2
    assert rel_err(out_b, ref_forward(x, adj, weight_b, bias_b)) < 2e-2

    # --- Test 2: unaligned N + forced small tiles ----------------------------
    # Exercises the ragged last row tile (cdiv grid) and the multi-step K
    # accumulation path of the kernel.
    B2, N2, Fin2, Fout2 = 1, 300, 20, 40
    x2 = jax.random.normal(k_x2, (B2, N2, Fin2), jnp.float32)
    adj2 = jax.random.normal(k_adj2, (B2, N2, N2), jnp.float32)
    w2, b2 = init_gcn_params(k_p, Fin2, Fout2, bias=True)
    out2 = jax.block_until_ready(
        graph_convolution(x2, adj2, w2, b2, tile_m=256, tile_k=128))
    assert out2.shape == (B2, N2, Fout2)
    assert rel_err(out2, ref_forward(x2, adj2, w2, b2)) < 2e-2

    print("KERNEL_OK")
</pallas_src>

<mosaic_0001>
module attributes {stable_mosaic.version = 11 : i64} {
  func.func @_gcn_adj_matmul_kernel(%arg0: i32, %arg1: i32, %arg2: i32, %arg3: memref<1x128x128xf32, #tpu.memory_space<vmem>>, %arg4: memref<1x128x128xbf16, #tpu.memory_space<vmem>>, %arg5: memref<1x128xf32, #tpu.memory_space<vmem>>, %arg6: memref<1x128x128xf32, #tpu.memory_space<vmem>>) attributes {dimension_semantics = [#tpu.dimension_semantics<parallel>, #tpu.dimension_semantics<parallel>, #tpu.dimension_semantics<arbitrary>], iteration_bounds = array<i64: 2, 1, 1>, scalar_prefetch = 0 : i64, scratch_operands = 0 : i64, tpu.core_type = #tpu.core_type<tc>, window_params = [{transform_indices = @transform_0, window_bounds = array<i64: 1, 128, 128>}, {transform_indices = @transform_1, window_bounds = array<i64: 1, 128, 128>}, {pipeline_mode = #tpu.pipeline_mode<synchronous>, transform_indices = @transform_2, window_bounds = array<i64: 1, 128>}, {transform_indices = @transform_3, window_bounds = array<i64: 1, 128, 128>}]} {
    %c0_i32 = arith.constant 0 : i32
    %0 = arith.cmpi eq, %arg2, %c0_i32 : i32
    %1 = arith.extui %0 : i1 to i32
    %c0_i32_0 = arith.constant 0 : i32
    %2 = arith.cmpi ne, %1, %c0_i32_0 : i32
    scf.if %2 {
      %c0_12 = arith.constant 0 : index
      %c0_13 = arith.constant 0 : index
      %15 = vector.load %arg5[%c0_12, %c0_13] : memref<1x128xf32, #tpu.memory_space<vmem>>, vector<1x128xf32>
      %16 = vector.shape_cast %15 : vector<1x128xf32> to vector<1x128xf32>
      %17 = vector.broadcast %16 : vector<1x128xf32> to vector<128x128xf32>
      %c0_14 = arith.constant 0 : index
      %c0_15 = arith.constant 0 : index
      %c0_16 = arith.constant 0 : index
      %18 = vector.load %arg6[%c0_14, %c0_15, %c0_16] : memref<1x128x128xf32, #tpu.memory_space<vmem>>, vector<1x128x128xf32>
      %19 = vector.shape_cast %18 : vector<1x128x128xf32> to vector<128x128xf32>
      %20 = vector.shape_cast %17 : vector<128x128xf32> to vector<1x128x128xf32>
      tpu.vector_store %arg6[%c0_14, %c0_15, %c0_16], %20 {strides = array<i32>} : memref<1x128x128xf32, #tpu.memory_space<vmem>>, vector<1x128x128xf32>,
    } else {
    }
    %c0 = arith.constant 0 : index
    %c0_1 = arith.constant 0 : index
    %c0_2 = arith.constant 0 : index
    %3 = vector.load %arg6[%c0, %c0_1, %c0_2] : memref<1x128x128xf32, #tpu.memory_space<vmem>>, vector<1x128x128xf32>
    %4 = vector.shape_cast %3 : vector<1x128x128xf32> to vector<128x128xf32>
    %c0_3 = arith.constant 0 : index
    %c0_4 = arith.constant 0 : index
    %c0_5 = arith.constant 0 : index
    %5 = vector.load %arg3[%c0_3, %c0_4, %c0_5] : memref<1x128x128xf32, #tpu.memory_space<vmem>>, vector<1x128x128xf32>
    %6 = vector.shape_cast %5 : vector<1x128x128xf32> to vector<128x128xf32>
    %7 = arith.truncf %6 : vector<128x128xf32> to vector<128x128xbf16>
    %c0_6 = arith.constant 0 : index
    %c0_7 = arith.constant 0 : index
    %c0_8 = arith.constant 0 : index
    %8 = vector.load %arg4[%c0_6, %c0_7, %c0_8] : memref<1x128x128xbf16, #tpu.memory_space<vmem>>, vector<1x128x128xbf16>
    %9 = vector.shape_cast %8 : vector<1x128x128xbf16> to vector<128x128xbf16>
    %cst = arith.constant dense<0.000000e+00> : vector<128x128xf32>
    %10 = tpu.matmul %7, %9, %cst {dimension_numbers = #tpu.dot_dimension_numbers<[1], [0], [0], [1], [0, 0, 1, 1], [], []>} : vector<128x128xbf16>, vector<128x128xbf16>, vector<128x128xf32> -> vector<128x128xf32>
    %11 = arith.addf %4, %10 : vector<128x128xf32>
    %c0_9 = arith.constant 0 : index
    %c0_10 = arith.constant 0 : index
    %c0_11 = arith.constant 0 : index
    %12 = vector.load %arg6[%c0_9, %c0_10, %c0_11] : memref<1x128x128xf32, #tpu.memory_space<vmem>>, vector<1x128x128xf32>
    %13 = vector.shape_cast %12 : vector<1x128x128xf32> to vector<128x128xf32>
    %14 = vector.shape_cast %11 : vector<128x128xf32> to vector<1x128x128xf32>
    tpu.vector_store %arg6[%c0_9, %c0_10, %c0_11], %14 {strides = array<i32>} : memref<1x128x128xf32, #tpu.memory_space<vmem>>, vector<1x128x128xf32>,
    return
  }
  func.func @transform_0(%arg0: i32, %arg1: i32, %arg2: i32) -> (i32, i32, i32) {
    %c0_i32 = arith.constant 0 : i32
    return %arg0, %arg1, %arg2 : i32, i32, i32
  }
  func.func @transform_1(%arg0: i32, %arg1: i32, %arg2: i32) -> (i32, i32, i32) {
    %c0_i32 = arith.constant 0 : i32
    %c0_i32_0 = arith.constant 0 : i32
    return %arg0, %arg2, %c0_i32 : i32, i32, i32
  }
  func.func @transform_2(%arg0: i32, %arg1: i32, %arg2: i32) -> (i32, i32) {
    %c0_i32 = arith.constant 0 : i32
    %c0_i32_0 = arith.constant 0 : i32
    %c0_i32_1 = arith.constant 0 : i32
    return %c0_i32, %c0_i32_0 : i32, i32
  }
  func.func @transform_3(%arg0: i32, %arg1: i32, %arg2: i32) -> (i32, i32, i32) {
    %c0_i32 = arith.constant 0 : i32
    %c0_i32_0 = arith.constant 0 : i32
    return %arg0, %arg1, %c0_i32 : i32, i32, i32
  }
}

</mosaic_0001>

<bundles_post_ra>
// kernel: graph_convolution.1
= control target key start
LH: loop header
LB: loop body
LE: loop exit
PB: predicated region body
PF: predicated region fallthrough
CT: control target
= control target key end

     0   :  { %s801_s12 = smov 0   ;;  %s803_s13 = smov 0   ;;  %s894_s0 = inlined_call_operand.vmem [shape: f32[2,128,128], index: 0, kind: input, shape index: {}]   ;;  %s895_s1 = inlined_call_operand.vmem [shape: bf16[2,128,128], index: 1, kind: input, shape index: {}]   ;;  %s896_s2 = inlined_call_operand.vmem [shape: f32[1,128], index: 2, kind: input, shape index: {}]   ;;  %s897_s3 = inlined_call_operand.vmem [shape: f32[2,128,128], index: 3, kind: output, shape index: {}]  }
   0x1   :  { %s805_s14 = smov 0  }
   0x2 LB: > { %s32_s15 = sadd.s32 1, %s775_s13  ;;  %p640_p0 = scmp.ge.s32.totalorder %s779_s14, 1  ;;  %s779_s14 = sphi %s805_s14, %s13_s14   ;;  %s775_s13 = sphi %s803_s13, %s899_s13   ;;  %s771_s12 = sphi %s801_s12, %s898_s12  }
   0x3   : > { %p34_p1 = scmp.ge.s32.totalorder %s32_s15, 2  ;;  %p187_p2 = scmp.lt.s32.totalorder %s779_s14, 3 }
   0x5   : > { %s901_s15 = smov (%p34_p1, %s32_s15), 0  ;;  %p188_p3 = pnand %p640_p0, %p187_p2 }
   0x6   : > { %p232_p4 = scmp.lt.s32.totalorder (!%p188_p3), %s771_s12, 1 }
   0x7   : > { %191 = sbr.rel (%p188_p3) target bundleno = 258 (0x102), region = 32 }
   0xc   : > { %s903_s12 = smov (!%p232_p4, %s771_s12), 1  ;;  %v647_v32 = vld [vmem:[%s896_s2] ss:$0 sm:$0xff] }
   0xd   : > { %s659_s16 = sshll.u32 %s903_s12, 6  ;;  %s658_s20 = sshll.u32 %s903_s12, 7 }
   0xe   : > { %s825_s19 = scalar_lea.vmem %s895_s1, %s659_s16  ;;  %s836_s23 = scalar_lea.vmem %s894_s0, %s658_s20 }
   0xf   : > { %v749_v0 = vld [vmem:[%s825_s19 + $0x38] sm:$0xff]   ;;  %v750_v1 = vld [vmem:[%s825_s19 + $0x30] sm:$0xff]   ;;  %v751_v2 = vld [vmem:[%s825_s19 + $0x28] sm:$0xff]   ;;  %s867_s28 = scalar_lea.vmem %s897_s3, %s658_s20 }
  0x10   : > { %677 = vmatprep.subr.bf16.mxu0 %v749_v0  ;;  %709 = vmatprep.subr.bf16.mxu1 %v749_v0  ;;  %v752_v3 = vld [vmem:[%s825_s19 + $0x20] sm:$0xff]   ;;  %v309_v5 = vld [vmem:[%s836_s23 + $0x8] sm:$0xff]  ;;  %v753_v10 = vld [vmem:[%s825_s19 + $0x18] sm:$0xff]  }
  0x11   : > { %678 = vmatpush3.bf16.msra.mxu0 %v749_v0  ;;  %717 = vmatpush3.bf16.msra.mxu1 %v749_v0  ;;  %v308_v4 = vld [vmem:[%s836_s23] sm:$0xff]  ;;  %v317_v8 = vld [vmem:[%s836_s23 + $0x48] sm:$0xff]  ;;  %v754_v11 = vld [vmem:[%s825_s19 + $0x10] sm:$0xff]  }
  0x12   : > { %679 = vmatprep.subr.bf16.mxu0 %v750_v1  ;;  %710 = vmatprep.subr.bf16.mxu1 %v750_v1  ;;  %v316_v6 = vld [vmem:[%s836_s23 + $0x40] sm:$0xff]  ;;  %v324_v7 = vpack.c.bf16 %v309_v5, %v308_v4  ;;  %v755_v12 = vld [vmem:[%s825_s19 + $0x8] sm:$0xff]   ;;  %v310_v14 = vld [vmem:[%s836_s23 + $0x10] sm:$0xff] }
  0x13   : > { %v328_v9 = vpack.c.bf16 %v317_v8, %v316_v6  ;;  %v756_v13 = vld [vmem:[%s825_s19] sm:$0xff]   ;;  %v311_v15 = vld [vmem:[%s836_s23 + $0x18] sm:$0xff]  ;;  %v318_v16 = vld [vmem:[%s836_s23 + $0x50] sm:$0xff] }
  0x14   : > { %693 = vmatprep.mubr.bf16.mxu0 %v324_v7  ;;  %v319_v17 = vld [vmem:[%s836_s23 + $0x58] sm:$0xff]  ;;  %v312_v18 = vld [vmem:[%s836_s23 + $0x20] sm:$0xff]  ;;  %v313_v19 = vld [vmem:[%s836_s23 + $0x28] sm:$0xff]  ;;  %v325_v22 = vpack.c.bf16 %v311_v15, %v310_v14 }
  0x15   : > { %680 = vmatpush3.bf16.msra.mxu0 %v750_v1  ;;  %718 = vmatpush3.bf16.msra.mxu1 %v750_v1  ;;  %v320_v20 = vld [vmem:[%s836_s23 + $0x60] sm:$0xff]  ;;  %v321_v21 = vld [vmem:[%s836_s23 + $0x68] sm:$0xff]  ;;  %v329_v23 = vpack.c.bf16 %v319_v17, %v318_v16  ;;  %v326_v24 = vpack.c.bf16 %v313_v19, %v312_v18  ;;  %v314_v26 = vld [vmem:[%s836_s23 + $0x30] sm:$0xff] }
  0x16   : > { %681 = vmatprep.subr.bf16.mxu0 %v751_v2  ;;  %711 = vmatprep.subr.bf16.mxu1 %v751_v2  ;;  %v330_v25 = vpack.c.bf16 %v321_v21, %v320_v20  ;;  %v315_v27 = vld [vmem:[%s836_s23 + $0x38] sm:$0xff]  ;;  %v322_v28 = vld [vmem:[%s836_s23 + $0x70] sm:$0xff] }
  0x17   : > { %701 = vmatprep.mubr.bf16.mxu1 %v328_v9  ;;  %v323_v29 = vld [vmem:[%s836_s23 + $0x78] sm:$0xff]  ;;  %v327_v30 = vpack.c.bf16 %v315_v27, %v314_v26 }
  0x18   : > { %v331_v31 = vpack.c.bf16 %v323_v29, %v322_v28 }
  0x19   : > { %682 = vmatpush3.bf16.msra.mxu0 %v751_v2  ;;  %719 = vmatpush3.bf16.msra.mxu1 %v751_v2 }
  0x1a   : > { %683 = vmatprep.subr.bf16.mxu0 %v752_v3  ;;  %712 = vmatprep.subr.bf16.mxu1 %v752_v3 }
  0x1d   : > { %684 = vmatpush3.bf16.msra.mxu0 %v752_v3  ;;  %720 = vmatpush3.bf16.msra.mxu1 %v752_v3 }
  0x1e   : > { %685 = vmatprep.subr.bf16.mxu0 %v753_v10  ;;  %713 = vmatprep.subr.bf16.mxu1 %v753_v10 }
  0x21   : > { %686 = vmatpush3.bf16.msra.mxu0 %v753_v10  ;;  %721 = vmatpush3.bf16.msra.mxu1 %v753_v10 }
  0x22   : > { %687 = vmatprep.subr.bf16.mxu0 %v754_v11  ;;  %714 = vmatprep.subr.bf16.mxu1 %v754_v11 }
  0x25   : > { %688 = vmatpush3.bf16.msra.mxu0 %v754_v11  ;;  %722 = vmatpush3.bf16.msra.mxu1 %v754_v11 }
  0x26   : > { %689 = vmatprep.subr.bf16.mxu0 %v755_v12  ;;  %715 = vmatprep.subr.bf16.mxu1 %v755_v12 }
  0x29   : > { %690 = vmatpush3.bf16.msra.mxu0 %v755_v12  ;;  %723 = vmatpush3.bf16.msra.mxu1 %v755_v12 }
  0x2a   : > { %691 = vmatprep.subr.bf16.mxu0 %v756_v13  ;;  %716 = vmatprep.subr.bf16.mxu1 %v756_v13 }
  0x2d   : > { %692 = vmatpush3.bf16.msra.mxu0 %v756_v13  ;;  %724 = vmatpush3.bf16.msra.mxu1 %v756_v13 }
  0x30   : > { %694 = vmatmul.mubr.bf16.vlgmr.msra.gmra.mxu0 %v325_v22  ;;  %702 = vmatmul.mubr.bf16.vlgmr.msra.gmra.mxu1 %v329_v23 }
  0x31   : > { %697 = vmatprep.mubr.bf16.mxu0 %v326_v24  ;;  %705 = vmatprep.mubr.bf16.mxu1 %v330_v25 }
  0x38   : > { %698 = vmatmul.mubr.bf16.gmra.mxu0 %v327_v30  ;;  %706 = vmatmul.mubr.bf16.gmra.mxu1 %v331_v31 }
  0xf0   : > { %v695_v33 = vpop.f32.mrf.mxu0  ;;  %v703_v34 = vpop.f32.mrf.mxu1 }
  0xf1   : > { %v495_v35 = vadd.f32 %v695_v33, %v647_v32  ;;  %v503_v36 = vadd.f32 %v703_v34, %v647_v32 }
  0xf2   : > { %v430_v37 = vpop.f32.mrf.mxu0  ;;  %v462_v38 = vpop.f32.mrf.mxu1 }
  0xf3   : > { %511 = vst [vmem:[%s867_s28 + $0x10] sm:$0xff] %v495_v35  ;;  %519 = vst [vmem:[%s867_s28 + $0x50] sm:$0xff] %v503_v36  ;;  %v493_v39 = vadd.f32 %v647_v32, %v430_v37  ;;  %v501_v40 = vadd.f32 %v647_v32, %v462_v38 }
  0xf4   : > { %v696_v41 = vpop.f32.mrf.mxu0  ;;  %v704_v42 = vpop.f32.mrf.mxu1 }
  0xf5   : > { %509 = vst [vmem:[%s867_s28] sm:$0xff] %v493_v39  ;;  %517 = vst [vmem:[%s867_s28 + $0x40] sm:$0xff] %v501_v40  ;;  %v496_v43 = vadd.f32 %v696_v41, %v647_v32  ;;  %v504_v44 = vadd.f32 %v704_v42, %v647_v32 }
  0xf6   : > { %v433_v45 = vpop.f32.mrf.mxu0  ;;  %v465_v46 = vpop.f32.mrf.mxu1 }
  0xf7   : > { %512 = vst [vmem:[%s867_s28 + $0x18] sm:$0xff] %v496_v43  ;;  %520 = vst [vmem:[%s867_s28 + $0x58] sm:$0xff] %v504_v44  ;;  %v494_v47 = vadd.f32 %v647_v32, %v433_v45  ;;  %v502_v48 = vadd.f32 %v647_v32, %v465_v46 }
  0xf8   : > { %v699_v49 = vpop.f32.mrf.mxu0  ;;  %v707_v50 = vpop.f32.mrf.mxu1 }
  0xf9   : > { %510 = vst [vmem:[%s867_s28 + $0x8] sm:$0xff] %v494_v47  ;;  %518 = vst [vmem:[%s867_s28 + $0x48] sm:$0xff] %v502_v48  ;;  %v499_v51 = vadd.f32 %v699_v49, %v647_v32  ;;  %v507_v52 = vadd.f32 %v707_v50, %v647_v32 }
  0xfa   : > { %v446_v53 = vpop.f32.mrf.mxu0  ;;  %v478_v54 = vpop.f32.mrf.mxu1 }
  0xfb   : > { %515 = vst [vmem:[%s867_s28 + $0x30] sm:$0xff] %v499_v51  ;;  %523 = vst [vmem:[%s867_s28 + $0x70] sm:$0xff] %v507_v52  ;;  %v497_v55 = vadd.f32 %v647_v32, %v446_v53  ;;  %v505_v56 = vadd.f32 %v647_v32, %v478_v54 }
  0xfc   : > { %v700_v57 = vpop.f32.mrf.mxu0  ;;  %v708_v58 = vpop.f32.mrf.mxu1 }
  0xfd   : > { %513 = vst [vmem:[%s867_s28 + $0x20] sm:$0xff] %v497_v55  ;;  %521 = vst [vmem:[%s867_s28 + $0x60] sm:$0xff] %v505_v56  ;;  %v500_v59 = vadd.f32 %v700_v57, %v647_v32  ;;  %v508_v60 = vadd.f32 %v708_v58, %v647_v32 }
  0xfe   : > { %v449_v61 = vpop.f32.mrf.mxu0  ;;  %v481_v62 = vpop.f32.mrf.mxu1 }
  0xff   : > { %516 = vst [vmem:[%s867_s28 + $0x38] sm:$0xff] %v500_v59  ;;  %524 = vst [vmem:[%s867_s28 + $0x78] sm:$0xff] %v508_v60  ;;  %v498_v63 = vadd.f32 %v647_v32, %v449_v61  ;;  %v506_v0 = vadd.f32 %v647_v32, %v481_v62 }
 0x101   : > { %514 = vst [vmem:[%s867_s28 + $0x28] sm:$0xff] %v498_v63  ;;  %522 = vst [vmem:[%s867_s28 + $0x68] sm:$0xff] %v506_v0 }
 0x102 PF: > { %s13_s14 = sadd.s32 1, %s779_s14   ;;  %s898_s12 = smov %s775_s13 }
 0x103   : > { %p10_p5 = scmp.ge.s32.totalorder %s13_s14, 4   ;;  %s899_s13 = smov %s901_s15 }
 0x105   :  { %12 = sbr.rel (!%p10_p5) target bundleno = 2 (0x2), region = 69 }

</bundles_post_ra>
